<compile_context>
chip_gen: v5e
topology: v5e:2x2
jax: 0.10.0
libtpu: 0.0.40
codegen_flags: <defaults>
</compile_context>

<pallas_src>
import jax
import jax.numpy as jnp
from jax import lax
from jax.experimental import pallas as pl
from jax.experimental.pallas import tpu as pltpu

EPS = 1e-5  # nn.LayerNorm default


def iln_kernel(x_ref, g_ref, b_ref, o_ref):
    x = x_ref[...].astype(jnp.float32)      # (TB, C, TS)
    g = g_ref[...][None]                    # (1, C, 1)
    b = b_ref[...][None]                    # (1, C, 1)

    inv_c = 1.0 / x.shape[1]
    mean = jnp.sum(x, axis=1, keepdims=True) * inv_c           # E[x]
    ex2 = jnp.sum(x * x, axis=1, keepdims=True) * inv_c        # E[x^2]
    var = jnp.maximum(ex2 - mean * mean, 0.0)                  # biased, clamped
    inv_std = lax.rsqrt(var + EPS)                             # EUP rsqrt

    # Fused normalize + affine, written straight to the output block.
    o_ref[...] = ((x - mean) * inv_std * g + b).astype(o_ref.dtype)


def _tpu_topology():
    """(tensorcores_per_device, vmem_capacity_bytes) with safe fallbacks."""
    vmem = 64 << 20     # conservative default (v7x per-TC VMEM)
    cores = 1           # conservative default (v5e / v6e)
    try:
        info = pltpu.get_tpu_info()
        for attr in ("vmem_capacity_bytes", "vmem_bytes", "vmem_size_bytes"):
            v = getattr(info, attr, None)
            if v:
                vmem = int(v)
                break
        for attr in ("num_tensorcores", "tensorcore_count", "num_cores",
                     "num_cores_per_chip", "cores_per_chip"):
            v = getattr(info, attr, None)
            if v:
                cores = int(v)
                break
    except Exception:
        pass
    if cores == 1:
        try:
            kind = jax.devices()[0].device_kind.lower()
            if any(t in kind for t in ("v7", "v4", "v5p", "v5 p")):
                cores = 2
        except Exception:
            pass
    return cores, vmem


def _choose_tiles(B, C, HW, num_cores, vmem_capacity, bytes_per_elem=4):
    """Pick (batch_tile, spatial_tile) with honest VMEM accounting."""
    padded_c = -(-C // 8) * 8  # sublane padding of the channel axis (f32 tiles)

    # Real footprint per grid step ~= (input block + output block), each
    # double-buffered by the pipeline -> 4x one padded block.  Cap the total
    # at half the physical VMEM (and 32 MiB absolute) to leave compiler
    # scratch headroom, especially on v7x's 64 MiB.
    budget = min(vmem_capacity // 2, 32 << 20)
    block_budget = max(budget // 4, padded_c * 128 * bytes_per_elem)

    def bbytes(tb, ts):
        return tb * padded_c * ts * bytes_per_elem

    # Grow the spatial (lane / contiguous-DMA) tile first.
    if HW % 128 == 0:
        ts = 128
        while (ts * 2 <= HW and HW % (ts * 2) == 0
               and bbytes(1, ts * 2) <= block_budget):
            ts *= 2
    else:
        ts = HW  # full-extent block is always a legal BlockSpec

    # Only grow the batch tile once the spatial tile covers the full extent.
    tb = 1
    if ts == HW:
        for cand in range(2, B + 1):
            if B % cand == 0 and bbytes(cand, ts) <= block_budget:
                tb = cand

    # Single-TC chips (v5e/v6e): done -- one maximal block is best.
    # Dual-TC chips (v7x / megacore): keep an even number of parallel grid
    # steps so both cores' DMA streams stay busy; split spatial first.
    if num_cores >= 2:
        steps = (B // tb) * (HW // ts)
        if steps % 2 != 0:
            if ts % 256 == 0:                     # halve spatial, stay lane-dense
                ts //= 2
            else:                                 # fall back to the batch axis
                for cand in range(tb, 0, -1):
                    if B % cand == 0 and (B // cand) % 2 == 0:
                        tb = cand
                        break
    return tb, ts


def image_layer_norm(x, gamma, beta):
    """x: (B, C, H, W); gamma/beta: (C,).  Returns same shape/dtype as x."""
    B, C, H, W = x.shape
    HW = H * W

    xf = x.reshape(B, C, HW)                           # lane-dense: H*W on lanes
    g2 = gamma.reshape(C, 1).astype(jnp.float32)
    b2 = beta.reshape(C, 1).astype(jnp.float32)

    num_cores, vmem_cap = _tpu_topology()
    tb, ts = _choose_tiles(B, C, HW, num_cores, vmem_cap,
                           bytes_per_elem=x.dtype.itemsize)
    grid = (B // tb, HW // ts)

    elems = B * C * HW
    cost = pl.CostEstimate(
        flops=8 * elems,
        bytes_accessed=2 * elems * x.dtype.itemsize + 2 * C * 4,
        transcendentals=B * HW,
    )

    grid_spec = pltpu.PrefetchScalarGridSpec(
        num_scalar_prefetch=0,
        grid=grid,
        in_specs=[
            pl.BlockSpec((tb, C, ts), lambda i, j: (i, 0, j)),   # x
            pl.BlockSpec((C, 1), lambda i, j: (0, 0)),           # gamma
            pl.BlockSpec((C, 1), lambda i, j: (0, 0)),           # beta
        ],
        out_specs=pl.BlockSpec((tb, C, ts), lambda i, j: (i, 0, j)),
    )

    out = pl.pallas_call(
        iln_kernel,
        out_shape=jax.ShapeDtypeStruct((B, C, HW), x.dtype),
        grid_spec=grid_spec,
        cost_estimate=cost,
        compiler_params=pltpu.CompilerParams(
            dimension_semantics=("parallel", "parallel"),
            vmem_limit_bytes=int(min(vmem_cap * 3 // 4, 64 << 20)),
        ),
    )(xf, g2, b2)

    return out.reshape(B, C, H, W)


def reference(x, gamma, beta):
    """Pure-JAX reference mirroring the PyTorch module."""
    xt = jnp.transpose(x, (0, 2, 3, 1)).astype(jnp.float32)     # (B, H, W, C)
    mean = jnp.mean(xt, axis=-1, keepdims=True)
    var = jnp.mean((xt - mean) ** 2, axis=-1, keepdims=True)
    y = (xt - mean) / jnp.sqrt(var + EPS) * gamma + beta
    return jnp.transpose(y, (0, 3, 1, 2)).astype(x.dtype)       # (B, C, H, W)


if __name__ == "__main__":
    B, C, H, W = 2, 4, 16, 16
    k1, k2, k3 = jax.random.split(jax.random.PRNGKey(0), 3)

    x = jax.random.normal(k1, (B, C, H, W), jnp.float32)
    gamma = 1.0 + 0.1 * jax.random.normal(k2, (C,), jnp.float32)
    beta = 0.1 * jax.random.normal(k3, (C,), jnp.float32)

    out = jax.block_until_ready(image_layer_norm(x, gamma, beta))
    ref = reference(x, gamma, beta)

    assert out.shape == x.shape and out.dtype == x.dtype
    max_err = jnp.max(jnp.abs(out - ref))
    if not bool(jnp.allclose(out, ref, atol=1e-5, rtol=1e-5)):
        raise AssertionError(f"kernel mismatch vs reference, max abs err={max_err}")
    print("KERNEL_OK")
</pallas_src>

<mosaic_0001>
module attributes {stable_mosaic.version = 11 : i64} {
  func.func @iln_kernel(%arg0: i32, %arg1: i32, %arg2: memref<2x4x256xf32, #tpu.memory_space<vmem>>, %arg3: memref<4x1xf32, #tpu.memory_space<vmem>>, %arg4: memref<4x1xf32, #tpu.memory_space<vmem>>, %arg5: memref<2x4x256xf32, #tpu.memory_space<vmem>>) attributes {dimension_semantics = [#tpu.dimension_semantics<parallel>, #tpu.dimension_semantics<parallel>], iteration_bounds = array<i64: 1, 1>, scalar_prefetch = 0 : i64, scratch_operands = 0 : i64, tpu.core_type = #tpu.core_type<tc>, window_params = [{transform_indices = @transform_0, window_bounds = array<i64: 2, 4, 256>}, {pipeline_mode = #tpu.pipeline_mode<synchronous>, transform_indices = @transform_1, window_bounds = array<i64: 4, 1>}, {pipeline_mode = #tpu.pipeline_mode<synchronous>, transform_indices = @transform_2, window_bounds = array<i64: 4, 1>}, {transform_indices = @transform_3, window_bounds = array<i64: 2, 4, 256>}]} {
    %c0 = arith.constant 0 : index
    %c0_0 = arith.constant 0 : index
    %c0_1 = arith.constant 0 : index
    %0 = vector.load %arg2[%c0, %c0_0, %c0_1] : memref<2x4x256xf32, #tpu.memory_space<vmem>>, vector<2x4x256xf32>
    %c0_2 = arith.constant 0 : index
    %c0_3 = arith.constant 0 : index
    %1 = vector.load %arg3[%c0_2, %c0_3] : memref<4x1xf32, #tpu.memory_space<vmem>>, vector<4x1xf32>
    %2 = vector.shape_cast %1 : vector<4x1xf32> to vector<1x4x1xf32>
    %c0_4 = arith.constant 0 : index
    %c0_5 = arith.constant 0 : index
    %3 = vector.load %arg4[%c0_4, %c0_5] : memref<4x1xf32, #tpu.memory_space<vmem>>, vector<4x1xf32>
    %4 = vector.shape_cast %3 : vector<4x1xf32> to vector<1x4x1xf32>
    %cst = arith.constant dense<0.000000e+00> : vector<2x256xf32>
    %5 = vector.multi_reduction <add>, %0, %cst [1] : vector<2x4x256xf32> to vector<2x256xf32>
    %6 = vector.shape_cast %5 : vector<2x256xf32> to vector<2x1x256xf32>
    %cst_6 = arith.constant 2.500000e-01 : f32
    %7 = vector.broadcast %cst_6 : f32 to vector<2x1x256xf32>
    %8 = arith.mulf %6, %7 : vector<2x1x256xf32>
    %9 = arith.mulf %0, %0 : vector<2x4x256xf32>
    %cst_7 = arith.constant dense<0.000000e+00> : vector<2x256xf32>
    %10 = vector.multi_reduction <add>, %9, %cst_7 [1] : vector<2x4x256xf32> to vector<2x256xf32>
    %11 = vector.shape_cast %10 : vector<2x256xf32> to vector<2x1x256xf32>
    %cst_8 = arith.constant 2.500000e-01 : f32
    %12 = vector.broadcast %cst_8 : f32 to vector<2x1x256xf32>
    %13 = arith.mulf %11, %12 : vector<2x1x256xf32>
    %14 = arith.mulf %8, %8 : vector<2x1x256xf32>
    %15 = arith.subf %13, %14 : vector<2x1x256xf32>
    %cst_9 = arith.constant 0.000000e+00 : f32
    %16 = vector.broadcast %cst_9 : f32 to vector<2x1x256xf32>
    %17 = arith.maximumf %15, %16 : vector<2x1x256xf32>
    %cst_10 = arith.constant 9.99999974E-6 : f32
    %18 = vector.broadcast %cst_10 : f32 to vector<2x1x256xf32>
    %19 = arith.addf %17, %18 : vector<2x1x256xf32>
    %20 = math.rsqrt %19 : vector<2x1x256xf32>
    %21 = vector.broadcast %8 : vector<2x1x256xf32> to vector<2x4x256xf32>
    %22 = arith.subf %0, %21 : vector<2x4x256xf32>
    %23 = vector.broadcast %20 : vector<2x1x256xf32> to vector<2x4x256xf32>
    %24 = arith.mulf %22, %23 : vector<2x4x256xf32>
    %25 = vector.broadcast %2 : vector<1x4x1xf32> to vector<2x4x256xf32>
    %26 = arith.mulf %24, %25 : vector<2x4x256xf32>
    %27 = vector.broadcast %4 : vector<1x4x1xf32> to vector<2x4x256xf32>
    %28 = arith.addf %26, %27 : vector<2x4x256xf32>
    %c0_11 = arith.constant 0 : index
    %c0_12 = arith.constant 0 : index
    %c0_13 = arith.constant 0 : index
    %29 = vector.load %arg5[%c0_11, %c0_12, %c0_13] : memref<2x4x256xf32, #tpu.memory_space<vmem>>, vector<2x4x256xf32>
    tpu.vector_store %arg5[%c0_11, %c0_12, %c0_13], %28 {strides = array<i32>} : memref<2x4x256xf32, #tpu.memory_space<vmem>>, vector<2x4x256xf32>,
    return
  }
  func.func @transform_0(%arg0: i32, %arg1: i32) -> (i32, i32, i32) {
    %c0_i32 = arith.constant 0 : i32
    %c0_i32_0 = arith.constant 0 : i32
    return %arg0, %c0_i32, %arg1 : i32, i32, i32
  }
  func.func @transform_1(%arg0: i32, %arg1: i32) -> (i32, i32) {
    %c0_i32 = arith.constant 0 : i32
    %c0_i32_0 = arith.constant 0 : i32
    %c0_i32_1 = arith.constant 0 : i32
    return %c0_i32, %c0_i32_0 : i32, i32
  }
  func.func @transform_2(%arg0: i32, %arg1: i32) -> (i32, i32) {
    %c0_i32 = arith.constant 0 : i32
    %c0_i32_0 = arith.constant 0 : i32
    %c0_i32_1 = arith.constant 0 : i32
    return %c0_i32, %c0_i32_0 : i32, i32
  }
  func.func @transform_3(%arg0: i32, %arg1: i32) -> (i32, i32, i32) {
    %c0_i32 = arith.constant 0 : i32
    %c0_i32_0 = arith.constant 0 : i32
    return %arg0, %c0_i32, %arg1 : i32, i32, i32
  }
}

</mosaic_0001>

<bundles_post_ra>
// kernel: tpu_custom_call.1
= control target key start
LH: loop header
LB: loop body
LE: loop exit
PB: predicated region body
PF: predicated region fallthrough
CT: control target
= control target key end

     0   :  { %8 = vsyncpa [#allocation3], 0  ;;  %s424_s0 = inlined_call_operand.hbm [shape: f32[2,4,256], index: 0, kind: input, shape index: {}]   ;;  %s425_s1 = inlined_call_operand.vmem [shape: f32[4,1], index: 1, kind: input, shape index: {}]   ;;  %s426_s2 = inlined_call_operand.vmem [shape: f32[4,1], index: 2, kind: input, shape index: {}]   ;;  %s427_s3 = inlined_call_operand.hbm [shape: f32[2,4,256], index: 3, kind: output, shape index: {}]  }
   0x1   :  { %9 = vsyncpa [#allocation4], 0  ;;  %s14_s14 = sshll.u32 %s424_s0, 4  ;;  %s318_s15 = smov [#allocation2]   ;;  %s15_s14 = int_to_ptr.hbm [resolvable:$true] %s14_s14 }
   0x2   :  { %s16_s16 = sshll.u32 %s318_s15, 4  ;;  %s319_s17 = smov 128   ;;  %s17_s16 = int_to_ptr.vmem [resolvable:$true] %s16_s16 }
   0x3   :  { %s320_s18 = smov 8  }
   0x4   :  { %22 = dma.hbm_to_vmem [thread:$0]  %s15_s14, 256, %s17_s16, [#allocation3], %s319_s17, %s319_s17, %s320_s18  }
   0x5   :  { %314 = dma.done.wait [#allocation3], 256  }
   0x6   :  { %315 = vsyncadd [#allocation3], 4294967040  ;;  %v321_v0 = vmov 0   ;;  %v33_v1 = vld [vmem:[%s425_s1] sm:$0xf]  ;;  %v356_v3 = vld [vmem:[#allocation2] sm:$0xff] }
   0x7   :  { %257 = vset.pattern.permute.xlu0 %v321_v0  ;;  %v34_v2 = vld [vmem:[%s426_s2] sm:$0xf]  ;;  %v358_v4 = vld [vmem:[#allocation2 + $0x8] sm:$0xff]  ;;  %37 = vst [vmem:[#allocation1] ss:$2 sm:$0xff] %v356_v3  ;;  %v81_v5 = vmul.f32 %v356_v3, %v356_v3  ;;  %vm48_vm0 = vcmask 1043456  }
   0x8   :  { %210 = vperm.xlu0 %257, %v33_v1   ;;  %41 = vst [vmem:[#allocation1 + $0x10] ss:$2 sm:$0xff] %v358_v4  ;;  %v82_v6 = vmul.f32 %v358_v4, %v358_v4  ;;  %s323_s1 = smov [#allocation5]   ;;  %s238_s24 = sshll.u32 %s427_s3, 4  ;;  %s239_s24 = int_to_ptr.hbm [resolvable:$true] %s238_s24 }
   0x9   :  { %s236_s2 = sshll.u32 %s323_s1, 4  ;;  %s237_s2 = int_to_ptr.vmem [resolvable:$true] %s236_s2 }
   0xe   :  { %v38_v7 = vld.sshfl [vmem:[#allocation1] sm:$0xff pattern:$0x75316420]  ;;  %v39_v8 = vld.sshfl [vmem:[#allocation1 + $0x8] sm:$0xff pattern:$0x75316420] }
   0xf   :  { %v42_v9 = vld.sshfl [vmem:[#allocation1 + $0x10] sm:$0xff pattern:$0x75316420]  ;;  %v43_v10 = vld.sshfl [vmem:[#allocation1 + $0x18] sm:$0xff pattern:$0x75316420] }
  0x10   :  { %221 = vperm.xlu0 %257, %v34_v2   ;;  %85 = vst [vmem:[#allocation1] ss:$2 sm:$0xff] %v81_v5  ;;  %v56_v11 = vsel %vm48_vm0, %v39_v8, 0.0  ;;  %v70_v12 = vsel %vm48_vm0, %v43_v10, 0.0  ;;  %v49_v15 = vsel %vm48_vm0, %v38_v7, 0.0  ;;  %v63_v16 = vsel %vm48_vm0, %v42_v9, 0.0 }
  0x11   :  { %89 = vst [vmem:[#allocation1 + $0x10] ss:$2 sm:$0xff] %v82_v6  ;;  %v57_v13 = vrot.slane %v56_v11, 4  ;;  %v71_v14 = vrot.slane %v70_v12, 4  ;;  %v50_v18 = vrot.slane %v49_v15, 4  ;;  %v64_v20 = vrot.slane %v63_v16, 4 }
  0x13   :  { %v58_v19 = vadd.f32 %v57_v13, %v56_v11  ;;  %v72_v21 = vadd.f32 %v71_v14, %v70_v12  ;;  %v51_v25 = vadd.f32 %v50_v18, %v49_v15  ;;  %v65_v27 = vadd.f32 %v64_v20, %v63_v16 }
  0x15   :  { %v59_v26 = vrot.slane %v58_v19, 2  ;;  %v73_v28 = vrot.slane %v72_v21, 2  ;;  %v52_v33 = vrot.slane %v51_v25, 2  ;;  %v66_v39 = vrot.slane %v65_v27, 2 }
  0x17   :  { %v87_v17 = vld.sshfl [vmem:[#allocation1 + $0x8] sm:$0xff pattern:$0x75316420]  ;;  %v86_v22 = vld.sshfl [vmem:[#allocation1] sm:$0xff pattern:$0x75316420]  ;;  %v60_v34 = vadd.f32 %v59_v26, %v58_v19  ;;  %v74_v40 = vadd.f32 %v73_v28, %v72_v21  ;;  %v53_v45 = vadd.f32 %v52_v33, %v51_v25  ;;  %v67_v50 = vadd.f32 %v66_v39, %v65_v27 }
  0x18   :  { %v90_v23 = vld.sshfl [vmem:[#allocation1 + $0x10] sm:$0xff pattern:$0x75316420]  ;;  %v91_v24 = vld.sshfl [vmem:[#allocation1 + $0x18] sm:$0xff pattern:$0x75316420] }
  0x19   :  { %v96_v29 = vsel %vm48_vm0, %v86_v22, 0.0  ;;  %v103_v30 = vsel %vm48_vm0, %v87_v17, 0.0  ;;  %v110_v31 = vsel %vm48_vm0, %v90_v23, 0.0  ;;  %v117_v32 = vsel %vm48_vm0, %v91_v24, 0.0 }
  0x1a   :  { %v97_v35 = vrot.slane %v96_v29, 4  ;;  %v104_v36 = vrot.slane %v103_v30, 4  ;;  %v111_v37 = vrot.slane %v110_v31, 4  ;;  %v118_v38 = vrot.slane %v117_v32, 4 }
  0x1b   :  { %v61_v46 = vrot.slane %v60_v34, 1  ;;  %v75_v51 = vrot.slane %v74_v40, 1  ;;  %v54_v55 = vrot.slane %v53_v45, 1  ;;  %v68_v59 = vrot.slane %v67_v50, 1 }
  0x1c   :  { %v98_v41 = vadd.f32 %v97_v35, %v96_v29  ;;  %v105_v42 = vadd.f32 %v104_v36, %v103_v30  ;;  %v112_v43 = vadd.f32 %v111_v37, %v110_v31  ;;  %v119_v44 = vadd.f32 %v118_v38, %v117_v32 }
  0x1d   :  { %v62_v56 = vadd.f32 %v61_v46, %v60_v34  ;;  %v76_v60 = vadd.f32 %v75_v51, %v74_v40  ;;  %v55_v63 = vadd.f32 %v54_v55, %v53_v45  ;;  %v69_v5 = vadd.f32 %v68_v59, %v67_v50 }
  0x1e   :  { %v99_v47 = vrot.slane %v98_v41, 2  ;;  %v106_v48 = vrot.slane %v105_v42, 2  ;;  %v120_v49 = vrot.slane %v119_v44, 2  ;;  %v113_v52 = vrot.slane %v112_v43, 2 }
  0x1f   :  { %v374_v0 = vmul.f32 0.25, %v62_v56  ;;  %v376_v6 = vmul.f32 0.25, %v76_v60  ;;  %v378_v9 = vmul.f32 0.25, %v55_v63  ;;  %v382_v13 = vmul.f32 0.25, %v69_v5 }
  0x20   :  { %v107_v53 = vadd.f32 %v106_v48, %v105_v42  ;;  %v121_v54 = vadd.f32 %v120_v49, %v119_v44  ;;  %v100_v57 = vadd.f32 %v99_v47, %v98_v41  ;;  %v114_v61 = vadd.f32 %v113_v52, %v112_v43 }
  0x21   :  { %v129_v12 = vmul.f32 %v374_v0, %v374_v0  ;;  %v131_v16 = vmul.f32 %v376_v6, %v376_v6  ;;  %v128_v18 = vmul.f32 %v378_v9, %v378_v9  ;;  %v130_v21 = vmul.f32 %v382_v13, %v382_v13 }
  0x22   :  { %v108_v58 = vrot.slane %v107_v53, 1  ;;  %v122_v62 = vrot.slane %v121_v54, 1  ;;  %v101_v1 = vrot.slane %v100_v57, 1  ;;  %v115_v7 = vrot.slane %v114_v61, 1 }
  0x24   :  { %v109_v2 = vadd.f32 %v108_v58, %v107_v53  ;;  %v123_v8 = vadd.f32 %v122_v62, %v121_v54  ;;  %v102_v10 = vadd.f32 %v101_v1, %v100_v57  ;;  %v116_v14 = vadd.f32 %v115_v7, %v114_v61 }
  0x25   :  { %v188_v57 = vrot.slane %v374_v0, 4  ;;  %v189_v58 = vrot.slane %v376_v6, 4  ;;  %v322_v1 = vmov 839922192  }
  0x26   :  { %v125_v11 = vmul.f32 0.25, %v109_v2  ;;  %v127_v15 = vmul.f32 0.25, %v123_v8  ;;  %v124_v17 = vmul.f32 0.25, %v102_v10  ;;  %v126_v20 = vmul.f32 0.25, %v116_v14 }
  0x27   :  { %v213_v2 = vunpack.c.l.s4 %v322_v1  ;;  %v190_v0 = vsel %vm48_vm0, %v378_v9, %v188_v57  ;;  %v191_v5 = vsel %vm48_vm0, %v382_v13, %v189_v58 }
  0x28   :  { %v133_v19 = vsub.f32 %v125_v11, %v129_v12  ;;  %v135_v22 = vsub.f32 %v127_v15, %v131_v16  ;;  %v132_v23 = vsub.f32 %v124_v17, %v128_v18  ;;  %v134_v25 = vsub.f32 %v126_v20, %v130_v21 }
  0x29   :  { %v214_v12 = vunpack.c.0.s8 %v213_v2  ;;  %v194_v14 = vsub.f32 %v356_v3, %v190_v0  ;;  %v195_v15 = vsub.f32 %v358_v4, %v191_v5 }
  0x2a   :  { %v137_v24 = vmax.f32 %v133_v19, 0.0  ;;  %v139_v26 = vmax.f32 %v135_v22, 0.0  ;;  %v136_v27 = vmax.f32 %v132_v23, 0.0  ;;  %v138_v29 = vmax.f32 %v134_v25, 0.0 }
  0x2c   :  { %v141_v28 = vadd.f32 1e-05, %v137_v24  ;;  %v143_v30 = vadd.f32 1e-05, %v139_v26  ;;  %v140_v31 = vadd.f32 1e-05, %v136_v27 }
  0x2d   :  { %v142_v32 = vadd.f32 1e-05, %v138_v29 }
  0x2e   :  { %258 = vrsqrt.f32 %v141_v28  ;;  %vm160_vm1 = vweird.f32 %v141_v28  ;;  %vm180_vm3 = vweird.f32 %v143_v30  ;;  %vm150_vm6 = vweird.f32 %v140_v31 }
  0x2f   :  { %260 = vrsqrt.f32 %v143_v30  ;;  %vm170_vm9 = vweird.f32 %v142_v32 }
  0x30   :  { %262 = vrsqrt.f32 %v140_v31 }
  0x31   :  { %264 = vrsqrt.f32 %v142_v32 }
  0x34   :  { %v259_v33 = vpop.eup %258 }
  0x35   :  { %v261_v34 = vpop.eup %260  ;;  %v155_v36 = vmul.f32 %v259_v33, %v141_v28  ;;  %vm161_vm2 = vweird.f32 %v259_v33 }
  0x36   :  { %v263_v35 = vpop.eup %262  ;;  %v175_v37 = vmul.f32 %v261_v34, %v143_v30  ;;  %vm181_vm4 = vweird.f32 %v261_v34  ;;  %vm390_vm5 = vmor %vm160_vm1, %vm161_vm2 }
  0x37   :  { %v265_v38 = vpop.eup %264  ;;  %v145_v39 = vmul.f32 %v263_v35, %v140_v31  ;;  %v156_v40 = vmul.f32 %v259_v33, %v155_v36  ;;  %vm151_vm7 = vweird.f32 %v263_v35  ;;  %vm394_vm8 = vmor %vm180_vm3, %vm181_vm4 }
  0x38   :  { %v165_v41 = vmul.f32 %v265_v38, %v142_v32  ;;  %v176_v42 = vmul.f32 %v261_v34, %v175_v37  ;;  %vm171_vm10 = vweird.f32 %v265_v38  ;;  %vm400_vm11 = vmor %vm150_vm6, %vm151_vm7 }
  0x39   :  { %v146_v43 = vmul.f32 %v263_v35, %v145_v39  ;;  %v157_v44 = vmul.f32 0.5, %v156_v40  ;;  %vm172_vm12 = vmor %vm170_vm9, %vm171_vm10 }
  0x3a   :  { %v166_v45 = vmul.f32 %v265_v38, %v165_v41  ;;  %v177_v46 = vmul.f32 0.5, %v176_v42 }
  0x3b   :  { %v147_v47 = vmul.f32 0.5, %v146_v43  ;;  %v158_v48 = vsub.f32 1.5, %v157_v44 }
  0x3c   :  { %v167_v49 = vmul.f32 0.5, %v166_v45  ;;  %v178_v50 = vsub.f32 1.5, %v177_v46 }
  0x3d   :  { %v148_v51 = vsub.f32 1.5, %v147_v47  ;;  %v159_v52 = vmul.f32 %v259_v33, %v158_v48 }
  0x3e   :  { %v168_v54 = vsub.f32 1.5, %v167_v49  ;;  %v179_v55 = vmul.f32 %v261_v34, %v178_v50 }
  0x3f   :  { %v149_v59 = vmul.f32 %v263_v35, %v148_v51  ;;  %v163_v61 = vsel %vm390_vm5, %v259_v33, %v159_v52 }
  0x40   :  { %v169_v62 = vmul.f32 %v265_v38, %v168_v54  ;;  %v183_v63 = vsel %vm394_vm8, %v261_v34, %v179_v55  ;;  %v200_v6 = vrot.slane %v163_v61, 4 }
  0x41   :  { %v201_v7 = vrot.slane %v183_v63, 4  ;;  %v153_v8 = vsel %vm400_vm11, %v263_v35, %v149_v59 }
  0x42   :  { %v173_v10 = vsel %vm172_vm12, %v265_v38, %v169_v62  ;;  %v202_v16 = vsel %vm48_vm0, %v153_v8, %v200_v6 }
  0x43   :  { %v203_v17 = vsel %vm48_vm0, %v173_v10, %v201_v7  ;;  %v206_v9 = vmul.f32 %v202_v16, %v194_v14 }
  0x44   :  { %v207_v18 = vmul.f32 %v203_v17, %v195_v15 }
  0x7a   :  { %v211_v11 = vpop.permute.xlu0 %210 }
  0x7b   :  { %v215_v19 = vperm.slane %v211_v11, %v214_v12 }
  0x7d   :  { %v217_v20 = vmul.f32 %v215_v19, %v206_v9  ;;  %v218_v21 = vmul.f32 %v215_v19, %v207_v18 }
  0x82   :  { %v222_v13 = vpop.permute.xlu0 %221 }
  0x83   :  { %v226_v22 = vperm.slane %v222_v13, %v214_v12 }
  0x85   :  { %v228_v3 = vadd.f32 %v226_v22, %v217_v20  ;;  %v229_v23 = vadd.f32 %v226_v22, %v218_v21 }
  0x87   :  { %230 = vst [vmem:[#allocation5] sm:$0xff] %v228_v3 }
  0x88   :  { %231 = vst [vmem:[#allocation5 + $0x8] sm:$0xff] %v229_v23 }
  0x89   :  { %244 = dma.vmem_to_hbm [thread:$0]  %s237_s2, 256, %s239_s24, [#allocation4], %s319_s17, %s319_s17, %s320_s18  }
  0x8a   :  { %316 = dma.done.wait [#allocation4], 256  }
  0x8b   :  { %317 = vsyncadd [#allocation4], 4294967040 }
  0x8c   :  { %249 = vsyncpa [#allocation3], 1 }
  0x8d   :  { %250 = vsyncpa [#allocation4], 1 }

</bundles_post_ra>
